<compile_context>
chip_gen: v7x
topology: tpu7x:2x2x1
jax: 0.10.0
libtpu: 0.0.40
codegen_flags: <defaults>
</compile_context>

<pallas_src>
import functools

import jax
import jax.numpy as jnp
from jax.experimental import pallas as pl
from jax.experimental.pallas import tpu as pltpu


def _noise_clamp_kernel(bounds_ref, x_ref, noise_ref, o_ref, *, std):
    """Tiled elementwise pass: out = clamp(x + std * noise, mn, mx)."""
    mn = bounds_ref[0]          # f32 scalars from SMEM (scalar prefetch)
    mx = bounds_ref[1]

    x = x_ref[...].astype(jnp.float32)
    g = noise_ref[...].astype(jnp.float32)

    y = x + jnp.float32(std) * g
    # Clamp in the output dtype (matches torch, which works in the tensor
    # dtype throughout); exact no-op difference for f32.
    y = y.astype(o_ref.dtype)
    o_ref[...] = jnp.clip(y, mn.astype(o_ref.dtype), mx.astype(o_ref.dtype))


def gaussian_noise(x, std, key):
    """JAX/Pallas equivalent of Gaussian(std)(x) for an NCHW float tensor."""
    orig_shape = x.shape
    orig_dtype = x.dtype
    n = x.size

    lanes = 128
    rows = -(-n // lanes)                              # ceil(n / 128)
    block_rows = min(1024, ((rows + 7) // 8) * 8)      # <=0.5 MiB f32 / block
    padded_rows = -(-rows // block_rows) * block_rows
    padded_n = padded_rows * lanes
    num_blocks = padded_rows // block_rows

    # Global min/max on the ORIGINAL tensor (pad never contaminates bounds).
    mn = jnp.min(x).astype(jnp.float32)
    mx = jnp.max(x).astype(jnp.float32)
    bounds = jnp.stack([mn, mx])                       # (2,) f32 -> SMEM

    # Lane-dense 2D slab; keep the source dtype (no wrapper-side f32 copy).
    flat = x.reshape(-1)
    if padded_n != n:
        flat = jnp.pad(flat, (0, padded_n - n))
    x2 = flat.reshape(padded_rows, lanes)

    # Standard-normal noise, streamed tile-by-tile alongside x.
    noise = jax.random.normal(key, (padded_rows, lanes), dtype=jnp.float32)
    noise = noise.astype(x2.dtype)

    block = (block_rows, lanes)
    idx = lambda i, bounds_ref: (i, 0)

    out = pl.pallas_call(
        functools.partial(_noise_clamp_kernel, std=float(std)),
        out_shape=jax.ShapeDtypeStruct((padded_rows, lanes), orig_dtype),
        grid_spec=pltpu.PrefetchScalarGridSpec(
            num_scalar_prefetch=1,                      # bounds land in SMEM
            grid=(num_blocks,),
            in_specs=[
                pl.BlockSpec(block, idx),               # x tile
                pl.BlockSpec(block, idx),               # noise tile
            ],
            out_specs=pl.BlockSpec(block, idx),
        ),
        compiler_params=pltpu.CompilerParams(
            dimension_semantics=("parallel",)),
    )(bounds, x2, noise)

    return out.reshape(-1)[:n].reshape(orig_shape).astype(orig_dtype)


if __name__ == "__main__":
    key = jax.random.PRNGKey(0)
    kx, kn = jax.random.split(key)

    # Small NCHW watermarked image: batch=2, channels=4, spatial=16x16.
    x = jax.random.normal(kx, (2, 4, 16, 16), dtype=jnp.float32)

    std = 0.1
    y = gaussian_noise(x, std, kn)
    y = jax.block_until_ready(y)

    # Sanity checks mirroring the module's semantics.
    mn = float(jnp.min(x))
    mx = float(jnp.max(x))
    assert y.shape == x.shape and y.dtype == x.dtype
    assert float(jnp.min(y)) >= mn - 1e-6
    assert float(jnp.max(y)) <= mx + 1e-6
    # Noise was actually added (not identical to input).
    assert float(jnp.max(jnp.abs(y - x))) > 0.0

    print("KERNEL_OK")
</pallas_src>

<mosaic_0001>
module attributes {stable_mosaic.version = 11 : i64} {
  func.func @_noise_clamp_kernel(%arg0: i32, %arg1: memref<2xf32, #tpu.memory_space<smem>>, %arg2: memref<16x128xf32, #tpu.memory_space<vmem>>, %arg3: memref<16x128xf32, #tpu.memory_space<vmem>>, %arg4: memref<16x128xf32, #tpu.memory_space<vmem>>) attributes {dimension_semantics = [#tpu.dimension_semantics<parallel>], iteration_bounds = array<i64: 1>, scalar_prefetch = 1 : i64, scratch_operands = 0 : i64, tpu.core_type = #tpu.core_type<tc>, window_params = [{transform_indices = @transform_0, window_bounds = array<i64: 16, 128>}, {transform_indices = @transform_1, window_bounds = array<i64: 16, 128>}, {transform_indices = @transform_2, window_bounds = array<i64: 16, 128>}]} {
    %c0 = arith.constant 0 : index
    %0 = memref.load %arg1[%c0] : memref<2xf32, #tpu.memory_space<smem>>
    %c1 = arith.constant 1 : index
    %1 = memref.load %arg1[%c1] : memref<2xf32, #tpu.memory_space<smem>>
    %c0_0 = arith.constant 0 : index
    %c0_1 = arith.constant 0 : index
    %2 = vector.load %arg2[%c0_0, %c0_1] : memref<16x128xf32, #tpu.memory_space<vmem>>, vector<16x128xf32>
    %c0_2 = arith.constant 0 : index
    %c0_3 = arith.constant 0 : index
    %3 = vector.load %arg3[%c0_2, %c0_3] : memref<16x128xf32, #tpu.memory_space<vmem>>, vector<16x128xf32>
    %cst = arith.constant 1.000000e-01 : f32
    %4 = vector.broadcast %cst : f32 to vector<16x128xf32>
    %5 = arith.mulf %4, %3 : vector<16x128xf32>
    %6 = arith.addf %2, %5 : vector<16x128xf32>
    %7 = vector.broadcast %0 : f32 to vector<16x128xf32>
    %8 = arith.maximumf %7, %6 : vector<16x128xf32>
    %9 = vector.broadcast %1 : f32 to vector<16x128xf32>
    %10 = arith.minimumf %9, %8 : vector<16x128xf32>
    %c0_4 = arith.constant 0 : index
    %c0_5 = arith.constant 0 : index
    %11 = vector.load %arg4[%c0_4, %c0_5] : memref<16x128xf32, #tpu.memory_space<vmem>>, vector<16x128xf32>
    tpu.vector_store %arg4[%c0_4, %c0_5], %10 {strides = array<i32>} : memref<16x128xf32, #tpu.memory_space<vmem>>, vector<16x128xf32>,
    return
  }
  func.func @transform_0(%arg0: i32, %arg1: memref<2xf32, #tpu.memory_space<smem>>) -> (i32, i32) {
    %c0_i32 = arith.constant 0 : i32
    %c0_i32_0 = arith.constant 0 : i32
    return %arg0, %c0_i32 : i32, i32
  }
  func.func @transform_1(%arg0: i32, %arg1: memref<2xf32, #tpu.memory_space<smem>>) -> (i32, i32) {
    %c0_i32 = arith.constant 0 : i32
    %c0_i32_0 = arith.constant 0 : i32
    return %arg0, %c0_i32 : i32, i32
  }
  func.func @transform_2(%arg0: i32, %arg1: memref<2xf32, #tpu.memory_space<smem>>) -> (i32, i32) {
    %c0_i32 = arith.constant 0 : i32
    %c0_i32_0 = arith.constant 0 : i32
    return %arg0, %c0_i32 : i32, i32
  }
}

</mosaic_0001>

<bundles_post_ra>
// kernel: tpu_custom_call.1
= control target key start
LH: loop header
LB: loop body
LE: loop exit
PB: predicated region body
PF: predicated region fallthrough
CT: control target
= control target key end

     0   :  { %s255_s0 = inlined_call_operand.hbm [shape: f32[2], index: 0, kind: input, shape index: {}]   ;;  %s256_s1 = inlined_call_operand.hbm [shape: f32[16,128], index: 1, kind: input, shape index: {}]   ;;  %s257_s2 = inlined_call_operand.hbm [shape: f32[16,128], index: 2, kind: input, shape index: {}]   ;;  %s258_s3 = inlined_call_operand.hbm [shape: f32[16,128], index: 3, kind: output, shape index: {}]  }
   0x1   :  { %s88_s14 = scalar_lea.hbm %s255_s0, 16 }
   0x2   :  { %p89_p0 = scmp.ne.s32.totalorder %s255_s0, %s88_s14  ;;  %p92_p1 = scmp.lt.u32.totalorder %s88_s14, %s255_s0 }
   0x4   :  { %p94_p2 = pnand %p92_p1, %p89_p0 }
   0x6   :  { %97 = shalt.err (!%p94_p2)  }
   0x7   :  { %s172_s19 = smov [#allocation3]  }
   0x8   :  { %9 = dma.hbm_to_smem %s255_s0, 16, %s172_s19, [#allocation2] }
   0x9   :  { %164 = dma.done.wait [#allocation2], 16 }
   0xa   :  { %165 = vsyncadd [#allocation2], 4294967280 }
   0xb   :  { %11 = sfence }
   0xc   :  { %12 = vsyncpa [#allocation5], 0 }
   0xd   :  { %13 = vsyncpa [#allocation8], 0 }
   0xe   :  { %14 = vsyncpa [#allocation6], 0  ;;  %s173_s22 = smov [#allocation4]   ;;  %s98_s26 = scalar_lea.hbm %s256_s1, 256 }
   0xf   :  { %s20_s23 = sshll.u32 %s173_s22, 4  ;;  %p99_p3 = scmp.ne.s32.totalorder %s256_s1, %s98_s26  ;;  %s21_s23 = int_to_ptr.vmem [resolvable:$true] %s20_s23 }
  0x10   :  { %p102_p4 = scmp.lt.u32.totalorder %s98_s26, %s256_s1 }
  0x12   :  { %p104_p5 = pnand %p102_p4, %p99_p3 }
  0x14   :  { %107 = shalt.err (!%p104_p5)
}
  0x15   :  { %s108_s0 = scalar_lea.vmem %s21_s23, 256  ;;  %p113_p7 = scmp.lt.s32.totalorder %s21_s23, %s21_s23 }
  0x16   :  { %p109_p6 = scmp.ne.s32.totalorder %s21_s23, %s108_s0  ;;  %p114_p8 = scmp.lt.s32.totalorder %s108_s0, %s108_s0 }
  0x18   :  { %p115_p9 = por %p114_p8, %p113_p7 }
  0x1a   :  { %p116_p10 = pnand %p115_p9, %p109_p6 }
  0x1c   :  { %119 = shalt.err (!%p116_p10)
}
  0x1d   :  { %s174_s4 = smov 128   ;;  %s175_s5 = smov 8  }
  0x1e   :  { %26 = dma.hbm_to_vmem [thread:$0]  %s256_s1, 256, %s21_s23, [#allocation5], %s174_s4, %s174_s4, %s175_s5  }
  0x1f   :  { %s176_s8 = smov [#allocation7]   ;;  %s120_s12 = scalar_lea.hbm %s257_s2, 256 }
  0x20   :  { %s32_s9 = sshll.u32 %s176_s8, 4  ;;  %p121_p11 = scmp.ne.s32.totalorder %s257_s2, %s120_s12  ;;  %s33_s9 = int_to_ptr.vmem [resolvable:$true] %s32_s9 }
  0x21   :  { %p124_p12 = scmp.lt.u32.totalorder %s120_s12, %s257_s2 }
  0x23   :  { %p126_p13 = pnand %p124_p12, %p121_p11 }
  0x25   :  { %129 = shalt.err (!%p126_p13)
}
  0x26   :  { %s130_s17 = scalar_lea.vmem %s33_s9, 256  ;;  %p135_p1 = scmp.lt.s32.totalorder %s33_s9, %s33_s9 }
  0x27   :  { %p131_p0 = scmp.ne.s32.totalorder %s33_s9, %s130_s17  ;;  %p136_p2 = scmp.lt.s32.totalorder %s130_s17, %s130_s17 }
  0x29   :  { %p137_p3 = por %p136_p2, %p135_p1 }
  0x2b   :  { %p138_p4 = pnand %p137_p3, %p131_p0 }
  0x2d   :  { %141 = shalt.err (!%p138_p4)
}
  0x2e   :  { %38 = dma.hbm_to_vmem [thread:$0]  %s257_s2, 256, %s33_s9, [#allocation8], %s174_s4, %s174_s4, %s175_s5  }
  0x2f   :  { %166 = dma.done.wait [#allocation5], 256  }
  0x30   :  { %167 = vsyncadd [#allocation5], 4294967040 }
  0x31   :  { %168 = dma.done.wait [#allocation8], 256  }
  0x32   :  { %169 = vsyncadd [#allocation8], 4294967040  ;;  %s45_s19 = sld [smem:[#allocation3]]  ;;  %s81_s20 = sld [smem:[#allocation3 + $0x1]]  ;;  %v47_v0 = vld [vmem:[#allocation4] sm:$0xff]  ;;  %v49_v1 = vld [vmem:[#allocation7] sm:$0xff] }
  0x33   :  { %v51_v2 = vmul.f32 0.1, %v49_v1  ;;  %v48_v3 = vld [vmem:[#allocation4 + $0x8] sm:$0xff]  ;;  %v50_v4 = vld [vmem:[#allocation7 + $0x8] sm:$0xff]  ;;  %s177_s21 = smov [#allocation9]  }
  0x34   :  { %v52_v6 = vmul.f32 0.1, %v50_v4  ;;  %s68_s22 = sshll.u32 %s177_s21, 4  ;;  %s69_s22 = int_to_ptr.vmem [resolvable:$true] %s68_s22 }
  0x35   :  { %v53_v7 = vadd.f32 %v51_v2, %v47_v0  ;;  %s142_s2 = scalar_lea.vmem %s69_s22, 256  ;;  %p147_p6 = scmp.lt.s32.totalorder %s69_s22, %s69_s22 }
  0x36   :  { %v54_v9 = vadd.f32 %v52_v6, %v48_v3  ;;  %p143_p5 = scmp.ne.s32.totalorder %s69_s22, %s142_s2  ;;  %p148_p7 = scmp.lt.s32.totalorder %s142_s2, %s142_s2 }
  0x38   :  { %v55_v5 = vstv %s45_s19  ;;  %v58_v8 = vstv %s81_s20  ;;  %p149_p8 = por %p148_p7, %p147_p6 }
  0x39   :  { %v56_v10 = vmax.f32 %v55_v5, %v53_v7  ;;  %v57_v11 = vmax.f32 %v55_v5, %v54_v9 }
  0x3a   :  { %p150_p9 = pnand %p149_p8, %p143_p5 }
  0x3b   :  { %v59_v12 = vmin.f32 %v58_v8, %v56_v10  ;;  %v60_v13 = vmin.f32 %v58_v8, %v57_v11 }
  0x3d   :  { %61 = vst [vmem:[#allocation9] sm:$0xff] %v59_v12  ;;  %62 = vst [vmem:[#allocation9 + $0x8] sm:$0xff] %v60_v13 }
  0x3e   :  { %153 = shalt.err (!%p150_p9)
}
  0x3f   :  { %s154_s25 = scalar_lea.hbm %s258_s3, 256 }
  0x40   :  { %p155_p10 = scmp.ne.s32.totalorder %s258_s3, %s154_s25  ;;  %p158_p11 = scmp.lt.u32.totalorder %s154_s25, %s258_s3 }
  0x42   :  { %p160_p12 = pnand %p158_p11, %p155_p10 }
  0x44   :  { %163 = shalt.err (!%p160_p12)
}
  0x45   :  { %74 = dma.vmem_to_hbm [thread:$0]  %s69_s22, 256, %s258_s3, [#allocation6], %s174_s4, %s174_s4, %s175_s5  }
  0x46   :  { %170 = dma.done.wait [#allocation6], 256  }
  0x47   :  { %171 = vsyncadd [#allocation6], 4294967040 }
  0x48   :  { %78 = vsyncpa [#allocation5], 1 }
  0x49   :  { %79 = vsyncpa [#allocation8], 1 }
  0x4a   :  { %80 = vsyncpa [#allocation6], 1 }

</bundles_post_ra>
